<compile_context>
chip_gen: v5e
topology: v5e:2x2
jax: 0.10.0
libtpu: 0.0.40
codegen_flags: <defaults>
</compile_context>

<pallas_src>
import functools

import jax
import jax.numpy as jnp
from jax.experimental import pallas as pl
from jax.experimental.pallas import tpu as pltpu

LANES = 128


def _elasnet_prox_kernel(x_ref, o_ref, *, scaling_mu, threshold):
    # softshrink(z, t) = z - clip(z, -t, t)  (3 VALU ops, no sign/select chain)
    z = x_ref[...].astype(jnp.float32) * scaling_mu
    o_ref[...] = (z - jnp.clip(z, -threshold, threshold)).astype(o_ref.dtype)


def _softshrink_jnp(z, t):
    return z - jnp.clip(z, -t, t)


def _round_up(a, b):
    return -(-a // b) * b


def elasnet_prox(x, lambd=0.5, mu=0.0, *, block_rows=4096):
    """Elastic-net proximal operator, elementwise. Same shape/dtype as x."""
    scaling_mu = float(1.0 / (1.0 + mu))
    threshold = float(lambd) * scaling_mu

    orig_shape = x.shape
    orig_dtype = x.dtype
    n = x.size

    x_flat = x.reshape(-1)
    bulk = (n // LANES) * LANES
    tail = n - bulk

    if bulk == 0:
        # Tiny input (< 128 elements): plain jnp, no kernel needed.
        z = x_flat.astype(jnp.float32) * scaling_mu
        return _softshrink_jnp(z, threshold).astype(orig_dtype).reshape(orig_shape)

    rows = bulk // LANES
    # Big blocks (up to ~2 MiB f32) but at least 2 grid steps when rows > 8,
    # so both v7x TensorCores get work. tile_rows is a multiple of 8.
    tile_rows = min(block_rows, max(8, _round_up(pl.cdiv(rows, 2), 8)))
    grid = (pl.cdiv(rows, tile_rows),)

    x2d = x_flat[:bulk].reshape(rows, LANES)  # free reshape of contiguous data

    kernel = functools.partial(
        _elasnet_prox_kernel, scaling_mu=scaling_mu, threshold=threshold
    )

    out2d = pl.pallas_call(
        kernel,
        out_shape=jax.ShapeDtypeStruct((rows, LANES), orig_dtype),
        grid_spec=pl.GridSpec(
            grid=grid,
            in_specs=[pl.BlockSpec((tile_rows, LANES), lambda i: (i, 0))],
            out_specs=pl.BlockSpec((tile_rows, LANES), lambda i: (i, 0)),
        ),
        compiler_params=pltpu.CompilerParams(
            dimension_semantics=("parallel",),
        ),
    )(x2d)

    out_bulk = out2d.reshape(-1)

    if tail:
        z_tail = x_flat[bulk:].astype(jnp.float32) * scaling_mu
        out_tail = _softshrink_jnp(z_tail, threshold).astype(orig_dtype)
        out_flat = jnp.concatenate([out_bulk, out_tail])
    else:
        out_flat = out_bulk

    return out_flat.reshape(orig_shape)


def _reference(x, lambd=0.5, mu=0.0):
    scaling_mu = 1.0 / (1.0 + mu)
    z = x * scaling_mu
    t = lambd * scaling_mu
    return jnp.where(
        z > t, z - t, jnp.where(z < -t, z + t, jnp.zeros_like(z))
    ).astype(x.dtype)


if __name__ == "__main__":
    key = jax.random.PRNGKey(0)
    x = jax.random.normal(key, (2, 4, 16, 16), dtype=jnp.float32)

    lambd, mu = 0.5, 0.1
    y = elasnet_prox(x, lambd=lambd, mu=mu)
    y = jax.block_until_ready(y)

    y_ref = _reference(x, lambd=lambd, mu=mu)
    assert y.shape == x.shape and y.dtype == x.dtype
    assert jnp.allclose(y, y_ref, atol=1e-6, rtol=1e-6)

    print("KERNEL_OK")
</pallas_src>

<mosaic_0001>
module attributes {stable_mosaic.version = 11 : i64} {
  func.func @_elasnet_prox_kernel(%arg0: i32, %arg1: memref<8x128xf32, #tpu.memory_space<vmem>>, %arg2: memref<8x128xf32, #tpu.memory_space<vmem>>) attributes {dimension_semantics = [#tpu.dimension_semantics<parallel>], iteration_bounds = array<i64: 2>, scalar_prefetch = 0 : i64, scratch_operands = 0 : i64, tpu.core_type = #tpu.core_type<tc>, window_params = [{transform_indices = @transform_0, window_bounds = array<i64: 8, 128>}, {transform_indices = @transform_1, window_bounds = array<i64: 8, 128>}]} {
    %c0 = arith.constant 0 : index
    %c0_0 = arith.constant 0 : index
    %0 = vector.load %arg1[%c0, %c0_0] : memref<8x128xf32, #tpu.memory_space<vmem>>, vector<8x128xf32>
    %cst = arith.constant 0.909090936 : f32
    %1 = vector.broadcast %cst : f32 to vector<8x128xf32>
    %2 = arith.mulf %0, %1 : vector<8x128xf32>
    %cst_1 = arith.constant -0.454545468 : f32
    %cst_2 = arith.constant 0.454545468 : f32
    %3 = vector.broadcast %cst_1 : f32 to vector<8x128xf32>
    %4 = arith.maximumf %3, %2 : vector<8x128xf32>
    %5 = vector.broadcast %cst_2 : f32 to vector<8x128xf32>
    %6 = arith.minimumf %5, %4 : vector<8x128xf32>
    %7 = arith.subf %2, %6 : vector<8x128xf32>
    %c0_3 = arith.constant 0 : index
    %c0_4 = arith.constant 0 : index
    %8 = vector.load %arg2[%c0_3, %c0_4] : memref<8x128xf32, #tpu.memory_space<vmem>>, vector<8x128xf32>
    tpu.vector_store %arg2[%c0_3, %c0_4], %7 {strides = array<i32>} : memref<8x128xf32, #tpu.memory_space<vmem>>, vector<8x128xf32>,
    return
  }
  func.func @transform_0(%arg0: i32) -> (i32, i32) {
    %c0_i32 = arith.constant 0 : i32
    %c0_i32_0 = arith.constant 0 : i32
    return %arg0, %c0_i32 : i32, i32
  }
  func.func @transform_1(%arg0: i32) -> (i32, i32) {
    %c0_i32 = arith.constant 0 : i32
    %c0_i32_0 = arith.constant 0 : i32
    return %arg0, %c0_i32 : i32, i32
  }
}

</mosaic_0001>

<bundles_post_ra>
// kernel: tpu_custom_call.1
= control target key start
LH: loop header
LB: loop body
LE: loop exit
PB: predicated region body
PF: predicated region fallthrough
CT: control target
= control target key end

     0   :  { %6 = vsyncpa [#allocation3], 0  ;;  %s520_s0 = inlined_call_operand.hbm [shape: f32[16,128], index: 0, kind: input, shape index: {}]   ;;  %s521_s1 = inlined_call_operand.hbm [shape: f32[16,128], index: 1, kind: output, shape index: {}]  }
   0x1   :  { %8 = vsyncpa [#allocation3 + $0x1], 0 }
   0x2   :  { %9 = vsyncpa [#allocation4], 0 }
   0x3   :  { %11 = vsyncpa [#allocation4 + $0x1], 0  ;;  %s393_s6 = smov 0   ;;  %s395_s7 = smov 0  }
   0x4   :  { %s397_s8 = smov 0   ;;  %s399_s9 = smov 0  }
   0x5 LB: > { %s414_s10 = sadd.s32 4294967295, %s381_s9   ;;  %s226_s11 = sadd.s32 4294967294, %s381_s9   ;;  %s381_s9 = sphi %s399_s9, %s531_s9   ;;  %s377_s8 = sphi %s397_s8, %s530_s8   ;;  %s373_s7 = sphi %s395_s7, %s529_s7   ;;  %s369_s6 = sphi %s393_s6, %s528_s6  }
   0x6   : > { %s418_s12 = sadd.s32 1, %s381_s9   ;;  %s24_s13 = sadd.s32 1, %s377_s8 }
   0x7   : > { %s21_s14 = ssub.s32 %s381_s9, %s418_s12  ;;  %p31_p0 = scmp.ne.s32.totalorder %s377_s8, %s373_s7 }
   0x8   : > { %p22_p1 = scmp.eq.s32.totalorder %s21_s14, 0  ;;  %p32_p2 = scmp.eq.s32.totalorder %s381_s9, 0 }
   0x9   : > { %p37_p3 = scmp.ne.s32.totalorder %s373_s7, %s369_s6  ;;  %p38_p4 = scmp.eq.s32.totalorder %s414_s10, 0 }
   0xa   : > { %s430_s15 = scalar_select %p22_p1, %s377_s8, %s24_s13  }
   0xb   : > { %p432_p5 = por %p32_p2, %p31_p0  ;;  %p436_p6 = por %p38_p4, %p37_p3 }
   0xc   : > { %p61_p7 = scmp.eq.s32.totalorder %s414_s10, 1  ;;  %p67_p8 = scmp.eq.s32.totalorder %s226_s11, 1 }
   0xd   : > { %p251_p10 = scmp.lt.s32.totalorder %s381_s9, 2  ;;  %s87_s20 = sand.u32 1, %s377_s8  }
   0xe   : > { %p443_p11 = por %p61_p7, %p31_p0  ;;  %p447_p12 = por %p67_p8, %p37_p3 }
   0xf   : > { %s230_s21 = sshll.u32 %s381_s9, 3  ;;  %s229_s22 = sshll.u32 %s87_s20, 3 }
  0x10   : > { %s95_s25 = scalar_lea.hbm %s520_s0, %s230_s21  ;;  %s91_s27 = scalar_lea.vmem [#allocation2], %s229_s22 }
  0x11   : > { %s97_s26 = sshll.u32 %s95_s25, 4  ;;  %s99_s28 = sshll.u32 %s91_s27, 4  ;;  %s98_s26 = int_to_ptr.hbm [resolvable:$true] %s97_s26  ;;  %s100_s28 = int_to_ptr.vmem [resolvable:$true] %s99_s28 }
  0x12   : > { %p458_p13 = pnand %p251_p10, %p432_p5  ;;  %p231_p0 = scmp.ge.s32.totalorder %s381_s9, 1 }
  0x13   : > { %p104_p1 = scmp.lt.s32.totalorder %s381_s9, 3  ;;  %s88_s30 = scalar_lea.sflag [#allocation3], %s87_s20 }
  0x14   : > { %s285_s2 = sshra.s32 %s98_s26, 4  ;;  %p289_p3 = pneg %p458_p13  ;;  %s286_s2 = int_to_ptr.hbm [resolvable:$true] %s285_s2 }
  0x15   : > { %s287_s3 = scalar_lea.hbm %s286_s2, 8  ;;  %s292_s11 = scalar_lea.hbm %s520_s0, 16 }
  0x16   : > { %p288_p2 = scmp.ne.s32.totalorder %s286_s2, %s287_s3  ;;  %p293_p5 = scmp.lt.s32.totalorder %s286_s2, %s520_s0 }
  0x17   : > { %p294_p8 = scmp.lt.s32.totalorder %s292_s11, %s287_s3 }
  0x18   : > { %p290_p4 = pnand %p289_p3, %p288_p2 }
  0x19   : > { %p295_p10 = por %p294_p8, %p293_p5 }
  0x1a   : > { %p291_p7 = pneg %p290_p4 }
  0x1c   : > { %p296_p9 = pnand %p295_p10, %p291_p7 }
  0x1e   : > { %299 = shalt.err (!%p296_p9)
}
  0x1f   : > { %246 = dma.hbm_to_vmem [thread:$0]  (!%p458_p13), %s98_s26, 128, %s100_s28, %s88_s30  }
  0x20   : > { %p105_p2 = pnand %p231_p0, %p104_p1 }
  0x21   : > { %s479_s16 = sand.u32 (!%p105_p2), 1, %s373_s7  }
  0x22   : > { %108 = sbr.rel (%p105_p2) target bundleno = 55 (0x37), region = 24  ;;  %s232_s20 = sshll.u32 (!%p105_p2), %s479_s16, 3 }
  0x23   : > { %s111_s21 = scalar_lea.sflag (!%p105_p2), [#allocation3], %s479_s16  ;;  %s114_s22 = scalar_lea.vmem (!%p105_p2), [#allocation2], %s232_s20 }
  0x27   : > { %360 = dma.done.wait (%p436_p6), %s111_s21, 128  }
  0x28   : > { %362 = vsyncadd (%p436_p6), %s111_s21, 4294967168  ;;  %s236_s23 = sshll.u32 %s414_s10, 3  ;;  %v134_v0 = vld [vmem:[%s114_s22] sm:$0xff]  ;;  %s133_s27 = scalar_lea.vmem [#allocation5], %s232_s20 }
  0x29   : > { %s151_s26 = scalar_lea.hbm %s521_s1, %s236_s23  ;;  %v135_v1 = vmul.f32 0.90909094, %v134_v0  ;;  %s153_s28 = sshll.u32 %s133_s27, 4  ;;  %s154_s28 = int_to_ptr.vmem [resolvable:$true] %s153_s28 }
  0x2a   : > { %s155_s29 = sshll.u32 %s151_s26, 4  ;;  %s141_s17 = scalar_lea.sflag [#allocation4], %s479_s16  ;;  %s156_s29 = int_to_ptr.hbm [resolvable:$true] %s155_s29 }
  0x2b   : > { %v234_v2 = vclamps-f32 %v135_v1, 0.45454547  ;;  %s329_s30 = sshra.s32 %s156_s29, 4  ;;  %s335_s4 = scalar_lea.hbm %s521_s1, 16  ;;  %s330_s30 = int_to_ptr.hbm [resolvable:$true] %s329_s30 }
  0x2c   : > { %s331_s2 = scalar_lea.hbm %s330_s30, 8  ;;  %p336_p0 = scmp.lt.s32.totalorder %s330_s30, %s521_s1 }
  0x2d   : > { %v138_v3 = vsub.f32 %v135_v1, %v234_v2  ;;  %p332_p6 = scmp.ne.s32.totalorder %s330_s30, %s331_s2  ;;  %p337_p1 = scmp.lt.s32.totalorder %s335_s4, %s331_s2 }
  0x2f   : > { %139 = vst [vmem:[%s133_s27] sm:$0xff] %v138_v3  ;;  %p333_p9 = pnand %p332_p6, %p443_p11  ;;  %p338_p3 = por %p337_p1, %p336_p0 }
  0x31   : > { %p334_p13 = pneg %p333_p9 }
  0x33   : > { %p339_p4 = pnand %p338_p3, %p334_p13 }
  0x35   : > { %342 = shalt.err (!%p339_p4)
}
  0x36   : > { %241 = dma.vmem_to_hbm [thread:$0]  (%p443_p11), %s154_s28, 128, %s156_s29, %s141_s17  }
  0x37 PF: > { %s167_s13 = sand.u32 1, %s369_s6   ;;  %p527_p7 = scmp.ge.s32.totalorder %s381_s9, 2 }
  0x38   : > { %s168_s14 = scalar_lea.sflag [#allocation4], %s167_s13 }
  0x39   : > { %p248_p5 = pnand %p527_p7, %p447_p12 }
  0x3b   : > { %p249_p8 = pneg %p248_p5 }
  0x3d   : > { %364 = dma.done.wait (%p249_p8), %s168_s14, 128  }
  0x3e   : > { %366 = vsyncadd (%p249_p8), %s168_s14, 4294967168  ;;  %p14_p10 = scmp.ge.s32.totalorder %s418_s12, 4   ;;  %s528_s6 = smov %s373_s7 }
  0x3f   : > { %s529_s7 = smov %s377_s8  ;;  %s530_s8 = smov %s430_s15 }
  0x40   : > { %s531_s9 = smov %s418_s12  ;;  %16 = sbr.rel (!%p14_p10) target bundleno = 5 (0x5), region = 69 }
  0x45   :  { %174 = vsyncpa [#allocation3], 1 }
  0x46   :  { %176 = vsyncpa [#allocation3 + $0x1], 1 }
  0x47   :  { %177 = vsyncpa [#allocation4], 1 }
  0x48   :  { %179 = vsyncpa [#allocation4 + $0x1], 1 }

</bundles_post_ra>
